<compile_context>
chip_gen: v6e
topology: v6e:2x2x1
jax: 0.10.0
libtpu: 0.0.40
codegen_flags: <defaults>
</compile_context>

<pallas_src>
import functools

import jax
import jax.numpy as jnp
from jax.experimental import pallas as pl
from jax.experimental.pallas import tpu as pltpu


LANE = 128          # lane width: pad feature dims to this for lane-dense MXU/stores
VMEM_LIMIT = 32 * 1024 * 1024   # explicit, safe on v5e/v6e/v7x


def _round_up(x, m):
    return ((x + m - 1) // m) * m


def _pad2(x, rows, cols):
    return jnp.pad(x, ((0, rows - x.shape[0]), (0, cols - x.shape[1])))


# ----------------------------------------------------------------------------
# Kernel 1: per-layer node transform   trans = X @ W_t + b   (+ linear residual)
#   W_t / Wr_t are pre-transposed (D_in_pad, D_out_pad) on the host.
# ----------------------------------------------------------------------------
def _transform_kernel(*refs, residual_mode):
    if residual_mode == "linear":
        x_ref, wt_ref, b_ref, wrt_ref, trans_ref, res_ref = refs
    else:
        x_ref, wt_ref, b_ref, trans_ref = refs

    x = x_ref[...]                                         # (TM, D_in_pad) f32
    trans = jnp.dot(x, wt_ref[...],
                    preferred_element_type=jnp.float32) + b_ref[...]
    trans_ref[...] = trans.astype(trans_ref.dtype)         # bf16, lane-dense

    if residual_mode == "linear":
        res_ref[...] = jnp.dot(x, wrt_ref[...],
                               preferred_element_type=jnp.float32)


def gcn_transform(x, w_t, b, wr_t, *, residual_mode, tile):
    """trans (bf16) and optional linear residual (f32) for all N_pad nodes."""
    n_pad, d_in = x.shape
    d_out = w_t.shape[1]
    grid = (n_pad // tile,)

    inputs = [x, w_t, b]
    in_specs = [
        pl.BlockSpec((tile, d_in), lambda i: (i, 0)),
        pl.BlockSpec((d_in, d_out), lambda i: (0, 0)),
        pl.BlockSpec((1, d_out), lambda i: (0, 0)),
    ]
    out_shapes = [jax.ShapeDtypeStruct((n_pad, d_out), jnp.bfloat16)]
    out_specs = [pl.BlockSpec((tile, d_out), lambda i: (i, 0))]

    if residual_mode == "linear":
        inputs.append(wr_t)
        in_specs.append(pl.BlockSpec((d_in, d_out), lambda i: (0, 0)))
        out_shapes.append(jax.ShapeDtypeStruct((n_pad, d_out), jnp.float32))
        out_specs.append(pl.BlockSpec((tile, d_out), lambda i: (i, 0)))

    outs = pl.pallas_call(
        functools.partial(_transform_kernel, residual_mode=residual_mode),
        out_shape=tuple(out_shapes),
        grid_spec=pltpu.PrefetchScalarGridSpec(
            num_scalar_prefetch=0,
            grid=grid,
            in_specs=in_specs,
            out_specs=tuple(out_specs)),
        compiler_params=pltpu.CompilerParams(
            dimension_semantics=("parallel",),
            vmem_limit_bytes=VMEM_LIMIT),
    )(*inputs)

    if residual_mode == "linear":
        return outs[0], outs[1]
    return outs[0], None


# ----------------------------------------------------------------------------
# Kernel 2: tiled graph aggregation   out = relu(A @ trans + res)
#   grid = (rows, k); bf16 A tiles stream through MXU into a f32 accumulator;
#   residual-add / ReLU fused into the k==last finalize.
# ----------------------------------------------------------------------------
def _aggregate_kernel(*refs, apply_relu, has_res):
    if has_res:
        a_ref, t_ref, r_ref, o_ref, acc_ref = refs
    else:
        a_ref, t_ref, o_ref, acc_ref = refs

    k = pl.program_id(1)

    @pl.when(k == 0)
    def _():
        acc_ref[...] = jnp.zeros_like(acc_ref)

    acc_ref[...] += jnp.dot(a_ref[...], t_ref[...],
                            preferred_element_type=jnp.float32)

    @pl.when(k == pl.num_programs(1) - 1)
    def _():
        out = acc_ref[...]
        if has_res:
            out = out + r_ref[...]
        if apply_relu:
            out = jnp.maximum(out, 0.0)
        o_ref[...] = out.astype(o_ref.dtype)


def gcn_aggregate(a_bf16, trans_bf16, res, *, apply_relu, tile):
    n_pad = a_bf16.shape[0]
    d_out = trans_bf16.shape[1]
    grid = (n_pad // tile, n_pad // tile)
    has_res = res is not None

    inputs = [a_bf16, trans_bf16]
    in_specs = [
        pl.BlockSpec((tile, tile), lambda i, k: (i, k)),
        pl.BlockSpec((tile, d_out), lambda i, k: (k, 0)),
    ]
    if has_res:
        inputs.append(res)
        in_specs.append(pl.BlockSpec((tile, d_out), lambda i, k: (i, 0)))

    return pl.pallas_call(
        functools.partial(_aggregate_kernel,
                          apply_relu=apply_relu, has_res=has_res),
        out_shape=jax.ShapeDtypeStruct((n_pad, d_out), jnp.float32),
        grid_spec=pltpu.PrefetchScalarGridSpec(
            num_scalar_prefetch=0,
            grid=grid,
            in_specs=in_specs,
            out_specs=pl.BlockSpec((tile, d_out), lambda i, k: (i, 0)),
            scratch_shapes=[pltpu.VMEM((tile, d_out), jnp.float32)]),
        compiler_params=pltpu.CompilerParams(
            dimension_semantics=("parallel", "arbitrary"),
            vmem_limit_bytes=VMEM_LIMIT),
    )(*inputs)


# ----------------------------------------------------------------------------
# GCN forward (stack of GraphConv layers)
# ----------------------------------------------------------------------------
def gcn_forward(A, user_feat, item_feat, layer_params, *, tile=256):
    n_users, n_items = user_feat.shape[0], item_feat.shape[0]
    N = n_users + n_items
    n_pad = _round_up(N, tile)

    # Node features live in ONE contiguous padded (N_pad, 128k) buffer across
    # layers (no per-layer concat / split HBM copies); zero row/col padding is
    # exact (padded rows/cols stay zero through every layer).
    d_in = user_feat.shape[1]
    d_in_pad = _round_up(d_in, LANE)
    x = jnp.zeros((n_pad, d_in_pad), jnp.float32)
    x = x.at[:n_users, :d_in].set(user_feat)
    x = x.at[n_users:N, :d_in].set(item_feat)

    # Dense adjacency (stand-in for torch.sparse.mm): pad to a tileable square
    # once and cast to bf16 to halve HBM traffic on the dominant stream.
    # TODO(synk): a truly sparse adjacency would use a CSR row-block gather
    # kernel with PrefetchScalarGridSpec instead of a dense N^2 matrix.
    a_bf16 = _pad2(A.astype(jnp.float32), n_pad, n_pad).astype(jnp.bfloat16)

    d_out = d_in
    for lp in layer_params:
        d_out = lp["W"].shape[0]
        d_out_pad = _round_up(d_out, LANE)

        # Host-side one-time weight prep: pre-transpose + lane-pad to 128.
        w_t = _pad2(lp["W"].T.astype(jnp.float32), x.shape[1], d_out_pad)
        b = _pad2(lp["b"].reshape(1, -1).astype(jnp.float32), 1, d_out_pad)

        mode = lp["residual_mode"]
        if mode == "linear":
            wr_t = _pad2(lp["Wr"].T.astype(jnp.float32), x.shape[1], d_out_pad)
            trans, res = gcn_transform(x, w_t, b, wr_t,
                                       residual_mode="linear", tile=tile)
        else:
            trans, _ = gcn_transform(x, w_t, b, None,
                                     residual_mode="none", tile=tile)
            res = x if mode == "identity" else None

        # F.dropout with p=0.0 / eval mode is the identity.
        # TODO(synk): stochastic dropout masking not implemented (p=0.0 here).
        x = gcn_aggregate(a_bf16, trans, res,
                          apply_relu=lp["apply_relu"], tile=tile)

    h_u = x[:n_users, :d_out]
    h_i = x[n_users:N, :d_out]
    return h_u, h_i


def gcn_forward_ref(A, user_feat, item_feat, layer_params):
    """Pure-JAX f32 reference (mirrors the PyTorch forward exactly)."""
    h_u, h_i = user_feat, item_feat
    for lp in layer_params:
        tu = h_u @ lp["W"].T + lp["b"]
        ti = h_i @ lp["W"].T + lp["b"]
        all_embs = jnp.concatenate([tu, ti], axis=0)
        conv = A @ all_embs
        cu, ci = conv[:h_u.shape[0]], conv[h_u.shape[0]:]
        if lp["residual_mode"] == "linear":
            cu = cu + h_u @ lp["Wr"].T
            ci = ci + h_i @ lp["Wr"].T
        elif lp["residual_mode"] == "identity":
            cu = cu + h_u
            ci = ci + h_i
        if lp["apply_relu"]:
            cu = jnp.maximum(cu, 0.0)
            ci = jnp.maximum(ci, 0.0)
        h_u, h_i = cu, ci
    return h_u, h_i


# ----------------------------------------------------------------------------
# Deterministic parameter construction (mimics module __init__ shapes)
# ----------------------------------------------------------------------------
def xavier_uniform(key, shape):
    fan_out, fan_in = shape
    bound = (6.0 / (fan_in + fan_out)) ** 0.5
    return jax.random.uniform(key, shape, jnp.float32, -bound, bound)


def linear_bias(key, fan_in, fan_out):
    bound = 1.0 / (fan_in ** 0.5)
    return jax.random.uniform(key, (fan_out,), jnp.float32, -bound, bound)


if __name__ == "__main__":
    # GCN(in_dim=16, hidden_dim=32, out_dim=32, num_layers=2, dropout=0.0,
    #     activation='relu', residual=True, norm=None, encoding=False)
    in_dim, hidden_dim, out_dim = 16, 32, 32
    n_users, n_items = 8, 8
    N = n_users + n_items

    key = jax.random.PRNGKey(0)
    k = jax.random.split(key, 8)

    # Layer 0: GraphConv(16 -> 32), residual=True with 16 != 32 -> Linear
    #          residual, activation=relu, norm=None.
    # Layer 1: GraphConv(32 -> 32), last_residual = encoding and residual =
    #          False, activation=None, norm=None.
    layer_params = [
        dict(W=xavier_uniform(k[0], (hidden_dim, in_dim)),
             b=linear_bias(k[1], in_dim, hidden_dim),
             Wr=xavier_uniform(k[2], (hidden_dim, in_dim)),
             residual_mode="linear", apply_relu=True),
        dict(W=xavier_uniform(k[3], (out_dim, hidden_dim)),
             b=linear_bias(k[4], hidden_dim, out_dim),
             residual_mode="none", apply_relu=False),
    ]

    # Dense (normalized-ish) adjacency and input features.
    A_graph = jax.random.uniform(k[5], (N, N), jnp.float32) / N
    user_feat = jax.random.normal(k[6], (n_users, in_dim), jnp.float32)
    item_feat = jax.random.normal(k[7], (n_items, in_dim), jnp.float32)

    h_u, h_i = gcn_forward(A_graph, user_feat, item_feat, layer_params)
    h_u = jax.block_until_ready(h_u)
    h_i = jax.block_until_ready(h_i)

    r_u, r_i = gcn_forward_ref(A_graph, user_feat, item_feat, layer_params)
    assert h_u.shape == (n_users, out_dim) and h_i.shape == (n_items, out_dim)
    # bf16 A / trans in the aggregation matmul -> loosened tolerance vs f32 ref.
    assert jnp.allclose(h_u, r_u, atol=3e-2, rtol=3e-2)
    assert jnp.allclose(h_i, r_i, atol=3e-2, rtol=3e-2)

    print("KERNEL_OK")
</pallas_src>

<mosaic_0001>
module attributes {stable_mosaic.version = 11 : i64} {
  func.func @_transform_kernel(%arg0: i32, %arg1: memref<256x128xf32, #tpu.memory_space<vmem>>, %arg2: memref<128x128xf32, #tpu.memory_space<vmem>>, %arg3: memref<1x128xf32, #tpu.memory_space<vmem>>, %arg4: memref<128x128xf32, #tpu.memory_space<vmem>>, %arg5: memref<256x128xbf16, #tpu.memory_space<vmem>>, %arg6: memref<256x128xf32, #tpu.memory_space<vmem>>) attributes {dimension_semantics = [#tpu.dimension_semantics<parallel>], iteration_bounds = array<i64: 1>, scalar_prefetch = 0 : i64, scratch_operands = 0 : i64, tpu.core_type = #tpu.core_type<tc>, window_params = [{transform_indices = @transform_0, window_bounds = array<i64: 256, 128>}, {pipeline_mode = #tpu.pipeline_mode<synchronous>, transform_indices = @transform_1, window_bounds = array<i64: 128, 128>}, {pipeline_mode = #tpu.pipeline_mode<synchronous>, transform_indices = @transform_2, window_bounds = array<i64: 1, 128>}, {pipeline_mode = #tpu.pipeline_mode<synchronous>, transform_indices = @transform_3, window_bounds = array<i64: 128, 128>}, {transform_indices = @transform_4, window_bounds = array<i64: 256, 128>}, {transform_indices = @transform_5, window_bounds = array<i64: 256, 128>}]} {
    %c0 = arith.constant 0 : index
    %c0_0 = arith.constant 0 : index
    %0 = vector.load %arg1[%c0, %c0_0] : memref<256x128xf32, #tpu.memory_space<vmem>>, vector<256x128xf32>
    %c0_1 = arith.constant 0 : index
    %c0_2 = arith.constant 0 : index
    %1 = vector.load %arg2[%c0_1, %c0_2] : memref<128x128xf32, #tpu.memory_space<vmem>>, vector<128x128xf32>
    %cst = arith.constant dense<0.000000e+00> : vector<256x128xf32>
    %2 = tpu.matmul %0, %1, %cst {dimension_numbers = #tpu.dot_dimension_numbers<[1], [0], [0], [1], [0, 0, 1, 1], [], []>} : vector<256x128xf32>, vector<128x128xf32>, vector<256x128xf32> -> vector<256x128xf32>
    %c0_3 = arith.constant 0 : index
    %c0_4 = arith.constant 0 : index
    %3 = vector.load %arg3[%c0_3, %c0_4] : memref<1x128xf32, #tpu.memory_space<vmem>>, vector<1x128xf32>
    %4 = vector.broadcast %3 : vector<1x128xf32> to vector<256x128xf32>
    %5 = arith.addf %2, %4 : vector<256x128xf32>
    %6 = arith.truncf %5 : vector<256x128xf32> to vector<256x128xbf16>
    %c0_5 = arith.constant 0 : index
    %c0_6 = arith.constant 0 : index
    %7 = vector.load %arg5[%c0_5, %c0_6] : memref<256x128xbf16, #tpu.memory_space<vmem>>, vector<256x128xbf16>
    tpu.vector_store %arg5[%c0_5, %c0_6], %6 {strides = array<i32>} : memref<256x128xbf16, #tpu.memory_space<vmem>>, vector<256x128xbf16>,
    %c0_7 = arith.constant 0 : index
    %c0_8 = arith.constant 0 : index
    %8 = vector.load %arg4[%c0_7, %c0_8] : memref<128x128xf32, #tpu.memory_space<vmem>>, vector<128x128xf32>
    %cst_9 = arith.constant dense<0.000000e+00> : vector<256x128xf32>
    %9 = tpu.matmul %0, %8, %cst_9 {dimension_numbers = #tpu.dot_dimension_numbers<[1], [0], [0], [1], [0, 0, 1, 1], [], []>} : vector<256x128xf32>, vector<128x128xf32>, vector<256x128xf32> -> vector<256x128xf32>
    %c0_10 = arith.constant 0 : index
    %c0_11 = arith.constant 0 : index
    %10 = vector.load %arg6[%c0_10, %c0_11] : memref<256x128xf32, #tpu.memory_space<vmem>>, vector<256x128xf32>
    tpu.vector_store %arg6[%c0_10, %c0_11], %9 {strides = array<i32>} : memref<256x128xf32, #tpu.memory_space<vmem>>, vector<256x128xf32>,
    return
  }
  func.func @transform_0(%arg0: i32) -> (i32, i32) {
    %c0_i32 = arith.constant 0 : i32
    %c0_i32_0 = arith.constant 0 : i32
    return %arg0, %c0_i32 : i32, i32
  }
  func.func @transform_1(%arg0: i32) -> (i32, i32) {
    %c0_i32 = arith.constant 0 : i32
    %c0_i32_0 = arith.constant 0 : i32
    %c0_i32_1 = arith.constant 0 : i32
    return %c0_i32, %c0_i32_0 : i32, i32
  }
  func.func @transform_2(%arg0: i32) -> (i32, i32) {
    %c0_i32 = arith.constant 0 : i32
    %c0_i32_0 = arith.constant 0 : i32
    %c0_i32_1 = arith.constant 0 : i32
    return %c0_i32, %c0_i32_0 : i32, i32
  }
  func.func @transform_3(%arg0: i32) -> (i32, i32) {
    %c0_i32 = arith.constant 0 : i32
    %c0_i32_0 = arith.constant 0 : i32
    %c0_i32_1 = arith.constant 0 : i32
    return %c0_i32, %c0_i32_0 : i32, i32
  }
  func.func @transform_4(%arg0: i32) -> (i32, i32) {
    %c0_i32 = arith.constant 0 : i32
    %c0_i32_0 = arith.constant 0 : i32
    return %arg0, %c0_i32 : i32, i32
  }
  func.func @transform_5(%arg0: i32) -> (i32, i32) {
    %c0_i32 = arith.constant 0 : i32
    %c0_i32_0 = arith.constant 0 : i32
    return %arg0, %c0_i32 : i32, i32
  }
}

</mosaic_0001>

<bundles_post_ra>
// kernel: tpu_custom_call.1
= control target key start
LH: loop header
LB: loop body
LE: loop exit
PB: predicated region body
PF: predicated region fallthrough
CT: control target
= control target key end

     0   :  { %11 = vsyncpa [#allocation3], 0  ;;  %s1445_s0 = inlined_call_operand.hbm [shape: f32[256,128], index: 0, kind: input, shape index: {}]   ;;  %s1446_s1 = inlined_call_operand.hbm [shape: f32[128,128], index: 1, kind: input, shape index: {}]   ;;  %s1447_s2 = inlined_call_operand.vmem [shape: f32[1,128], index: 2, kind: input, shape index: {}]   ;;  %s1448_s3 = inlined_call_operand.hbm [shape: f32[128,128], index: 3, kind: input, shape index: {}]   ;;  %s1449_s4 = inlined_call_operand.hbm [shape: bf16[256,128], index: 4, kind: output, shape index: {0}]   ;;  %s1450_s5 = inlined_call_operand.hbm [shape: f32[256,128], index: 5, kind: output, shape index: {1}]  }
   0x1   :  { %12 = vsyncpa [#allocation6], 0 }
   0x2   :  { %13 = vsyncpa [#allocation4], 0 }
   0x3   :  { %14 = vsyncpa [#allocation10], 0  ;;  %s1342_s18 = smov [#allocation5]   ;;  %s1343_s20 = smov [#allocation2]  }
   0x4   :  { %s32_s19 = sshll.u32 %s1342_s18, 4  ;;  %s20_s21 = sshll.u32 %s1343_s20, 4  ;;  %s33_s19 = int_to_ptr.vmem [resolvable:$true] %s32_s19  ;;  %s21_s21 = int_to_ptr.vmem [resolvable:$true] %s20_s21 }
   0x5   :  { %s1242_s22 = scalar_lea.vmem %s33_s19, 2048  ;;  %p1247_p1 = scmp.lt.s32.totalorder %s33_s19, %s33_s19 }
   0x6   :  { %p1243_p0 = scmp.ne.s32.totalorder %s33_s19, %s1242_s22  ;;  %p1248_p2 = scmp.lt.s32.totalorder %s1242_s22, %s1242_s22 }
   0x8   :  { %p1249_p3 = por %p1248_p2, %p1247_p1 }
   0xa   :  { %p1250_p4 = pnand %p1249_p3, %p1243_p0 }
   0xc   :  { %1253 = shalt.err (!%p1250_p4)
}
   0xd   :  { %s1344_s23 = smov 128   ;;  %s1345_s24 = smov 8  }
   0xe   :  { %38 = dma.hbm_to_vmem [thread:$0]  %s1446_s1, 2048, %s33_s19, [#allocation6], %s1344_s23, %s1344_s23, %s1345_s24  }
   0xf   :  { %s1262_s27 = scalar_lea.vmem %s21_s21, 4096  ;;  %p1267_p6 = scmp.lt.s32.totalorder %s21_s21, %s21_s21 }
  0x10   :  { %p1263_p5 = scmp.ne.s32.totalorder %s21_s21, %s1262_s27  ;;  %p1268_p7 = scmp.lt.s32.totalorder %s1262_s27, %s1262_s27 }
  0x12   :  { %p1269_p8 = por %p1268_p7, %p1267_p6 }
  0x14   :  { %p1270_p9 = pnand %p1269_p8, %p1263_p5 }
  0x16   :  { %1273 = shalt.err (!%p1270_p9)
}
  0x17   :  { %26 = dma.hbm_to_vmem [thread:$0]  %s1445_s0, 4096, %s21_s21, [#allocation3], %s1344_s23, %s1344_s23, %s1345_s24  }
  0x18   :  { %s1346_s30 = smov [#allocation7]  }
  0x19   :  { %s46_s6 = sshll.u32 %s1346_s30, 4  ;;  %s47_s6 = int_to_ptr.vmem [resolvable:$true] %s46_s6 }
  0x1a   :  { %s1282_s7 = scalar_lea.vmem %s47_s6, 2048  ;;  %p1287_p11 = scmp.lt.s32.totalorder %s47_s6, %s47_s6 }
  0x1b   :  { %p1283_p10 = scmp.ne.s32.totalorder %s47_s6, %s1282_s7  ;;  %p1288_p12 = scmp.lt.s32.totalorder %s1282_s7, %s1282_s7 }
  0x1d   :  { %p1289_p13 = por %p1288_p12, %p1287_p11 }
  0x1f   :  { %p1290_p0 = pnand %p1289_p13, %p1283_p10 }
  0x21   :  { %1293 = shalt.err (!%p1290_p0)
}
  0x22   :  { %52 = dma.hbm_to_vmem [thread:$0]  %s1448_s3, 2048, %s47_s6, [#allocation6], %s1344_s23, %s1344_s23, %s1345_s24  }
  0x23   :  { %1334 = dma.done.wait [#allocation3], 4096  }
  0x24   :  { %1335 = vsyncadd [#allocation3], 4294963200 }
  0x25   :  { %1336 = dma.done.wait [#allocation6], 4096  }
  0x26   :  { %1337 = vsyncadd [#allocation6], 4294963200  ;;  %v109_v0 = vld [vmem:[#allocation5 + $0x78] sm:$0xff]  ;;  %v108_v1 = vld [vmem:[#allocation5 + $0x70] sm:$0xff]  ;;  %s1348_s10 = smov [#allocation8]  }
  0x27   :  { %v517_v2 = vld [vmem:[#allocation7 + $0x78] sm:$0xff]  ;;  %1065 = vmatprep.subr.mxu0 %v109_v0  ;;  %v516_v3 = vld [vmem:[#allocation7 + $0x70] sm:$0xff]  ;;  %v107_v4 = vld [vmem:[#allocation5 + $0x68] sm:$0xff]  ;;  %s780_s11 = sshll.u32 %s1348_s10, 4  ;;  %s781_s11 = int_to_ptr.vmem [resolvable:$true] %s780_s11 }
  0x28   :  { %1145 = vmatprep.subr.mxu1 %v517_v2  ;;  %1066 = vmatpush3.msra.mxu0 %v109_v0  ;;  %v515_v5 = vld [vmem:[#allocation7 + $0x68] sm:$0xff]  ;;  %v106_v6 = vld [vmem:[#allocation5 + $0x60] sm:$0xff]  ;;  %v105_v8 = vld [vmem:[#allocation5 + $0x58] sm:$0xff] }
  0x29   :  { %1146 = vmatpush3.msra.mxu1 %v517_v2  ;;  %1067 = vmatprep.subr.mxu0 %v108_v1  ;;  %v514_v7 = vld [vmem:[#allocation7 + $0x60] sm:$0xff]  ;;  %v513_v9 = vld [vmem:[#allocation7 + $0x58] sm:$0xff]  ;;  %v104_v10 = vld [vmem:[#allocation5 + $0x50] sm:$0xff] }
  0x2a   :  { %1147 = vmatprep.subr.mxu1 %v516_v3  ;;  %1068 = vmatpush3.msra.mxu0 %v108_v1  ;;  %v512_v11 = vld [vmem:[#allocation7 + $0x50] sm:$0xff]  ;;  %v103_v12 = vld [vmem:[#allocation5 + $0x48] sm:$0xff]  ;;  %v102_v14 = vld [vmem:[#allocation5 + $0x40] sm:$0xff] }
  0x2b   :  { %1148 = vmatpush3.msra.mxu1 %v516_v3  ;;  %1069 = vmatprep.subr.mxu0 %v107_v4  ;;  %v511_v13 = vld [vmem:[#allocation7 + $0x48] sm:$0xff]  ;;  %v510_v15 = vld [vmem:[#allocation7 + $0x40] sm:$0xff]  ;;  %v101_v16 = vld [vmem:[#allocation5 + $0x38] sm:$0xff] }
  0x2c   :  { %1149 = vmatprep.subr.mxu1 %v515_v5  ;;  %1070 = vmatpush3.msra.mxu0 %v107_v4  ;;  %v509_v17 = vld [vmem:[#allocation7 + $0x38] sm:$0xff]  ;;  %v100_v18 = vld [vmem:[#allocation5 + $0x30] sm:$0xff]  ;;  %v99_v20 = vld [vmem:[#allocation5 + $0x28] sm:$0xff] }
  0x2d   :  { %1150 = vmatpush3.msra.mxu1 %v515_v5  ;;  %1071 = vmatprep.subr.mxu0 %v106_v6  ;;  %v508_v19 = vld [vmem:[#allocation7 + $0x30] sm:$0xff]  ;;  %v507_v21 = vld [vmem:[#allocation7 + $0x28] sm:$0xff]  ;;  %v98_v22 = vld [vmem:[#allocation5 + $0x20] sm:$0xff] }
  0x2e   :  { %1151 = vmatprep.subr.mxu1 %v514_v7  ;;  %1072 = vmatpush3.msra.mxu0 %v106_v6  ;;  %v506_v23 = vld [vmem:[#allocation7 + $0x20] sm:$0xff]  ;;  %v97_v24 = vld [vmem:[#allocation5 + $0x18] sm:$0xff]  ;;  %v96_v26 = vld [vmem:[#allocation5 + $0x10] sm:$0xff] }
  0x2f   :  { %1152 = vmatpush3.msra.mxu1 %v514_v7  ;;  %1073 = vmatprep.subr.mxu0 %v105_v8  ;;  %v505_v25 = vld [vmem:[#allocation7 + $0x18] sm:$0xff]  ;;  %v504_v27 = vld [vmem:[#allocation7 + $0x10] sm:$0xff]  ;;  %v95_v28 = vld [vmem:[#allocation5 + $0x8] sm:$0xff] }
  0x30   :  { %1153 = vmatprep.subr.mxu1 %v513_v9  ;;  %1074 = vmatpush3.msra.mxu0 %v105_v8  ;;  %v503_v29 = vld [vmem:[#allocation7 + $0x8] sm:$0xff]  ;;  %v62_v30 = vld [vmem:[#allocation2] sm:$0xff]  ;;  %v64_v34 = vld [vmem:[#allocation2 + $0x10] sm:$0xff] }
  0x31   :  { %1154 = vmatpush3.msra.mxu1 %v513_v9  ;;  %1075 = vmatprep.subr.mxu0 %v104_v10  ;;  %v94_v31 = vld [vmem:[#allocation5] sm:$0xff]  ;;  %v63_v33 = vld [vmem:[#allocation2 + $0x8] sm:$0xff]  ;;  %v65_v35 = vld [vmem:[#allocation2 + $0x18] sm:$0xff] }
  0x32   :  { %1155 = vmatprep.subr.mxu1 %v512_v11  ;;  %1076 = vmatpush3.msra.mxu0 %v104_v10  ;;  %v502_v32 = vld [vmem:[#allocation7] sm:$0xff]  ;;  %v67_v37 = vld [vmem:[#allocation2 + $0x28] sm:$0xff]  ;;  %v68_v38 = vld [vmem:[#allocation2 + $0x30] sm:$0xff] }
  0x33   :  { %1156 = vmatpush3.msra.mxu1 %v512_v11  ;;  %1077 = vmatprep.subr.mxu0 %v103_v12  ;;  %v66_v36 = vld [vmem:[#allocation2 + $0x20] sm:$0xff]  ;;  %v69_v39 = vld [vmem:[#allocation2 + $0x38] sm:$0xff]  ;;  %v71_v41 = vld [vmem:[#allocation2 + $0x48] sm:$0xff] }
  0x34   :  { %1157 = vmatprep.subr.mxu1 %v511_v13  ;;  %1078 = vmatpush3.msra.mxu0 %v103_v12  ;;  %v70_v40 = vld [vmem:[#allocation2 + $0x40] sm:$0xff]  ;;  %v72_v42 = vld [vmem:[#allocation2 + $0x50] sm:$0xff]  ;;  %v73_v43 = vld [vmem:[#allocation2 + $0x58] sm:$0xff] }
  0x35   :  { %1158 = vmatpush3.msra.mxu1 %v511_v13  ;;  %1079 = vmatprep.subr.mxu0 %v102_v14  ;;  %v74_v44 = vld [vmem:[#allocation2 + $0x60] sm:$0xff]  ;;  %v75_v45 = vld [vmem:[#allocation2 + $0x68] sm:$0xff]  ;;  %v76_v46 = vld [vmem:[#allocation2 + $0x70] sm:$0xff] }
  0x36   :  { %1159 = vmatprep.subr.mxu1 %v510_v15  ;;  %1080 = vmatpush3.msra.mxu0 %v102_v14  ;;  %v77_v47 = vld [vmem:[#allocation2 + $0x78] sm:$0xff]  ;;  %v78_v48 = vld [vmem:[#allocation2 + $0x80] sm:$0xff]  ;;  %v79_v49 = vld [vmem:[#allocation2 + $0x88] sm:$0xff] }
  0x37   :  { %1160 = vmatpush3.msra.mxu1 %v510_v15  ;;  %1081 = vmatprep.subr.mxu0 %v101_v16  ;;  %v80_v50 = vld [vmem:[#allocation2 + $0x90] sm:$0xff]  ;;  %v81_v51 = vld [vmem:[#allocation2 + $0x98] sm:$0xff]  ;;  %v82_v52 = vld [vmem:[#allocation2 + $0xa0] sm:$0xff] }
  0x38   :  { %1161 = vmatprep.subr.mxu1 %v509_v17  ;;  %1082 = vmatpush3.msra.mxu0 %v101_v16  ;;  %v83_v53 = vld [vmem:[#allocation2 + $0xa8] sm:$0xff]  ;;  %v84_v54 = vld [vmem:[#allocation2 + $0xb0] sm:$0xff]  ;;  %v85_v55 = vld [vmem:[#allocation2 + $0xb8] sm:$0xff] }
  0x39   :  { %1162 = vmatpush3.msra.mxu1 %v509_v17  ;;  %1083 = vmatprep.subr.mxu0 %v100_v18  ;;  %v86_v56 = vld [vmem:[#allocation2 + $0xc0] sm:$0xff]  ;;  %v87_v57 = vld [vmem:[#allocation2 + $0xc8] sm:$0xff]  ;;  %v88_v58 = vld [vmem:[#allocation2 + $0xd0] sm:$0xff] }
  0x3a   :  { %1163 = vmatprep.subr.mxu1 %v508_v19  ;;  %1084 = vmatpush3.msra.mxu0 %v100_v18  ;;  %v89_v59 = vld [vmem:[#allocation2 + $0xd8] sm:$0xff]  ;;  %v90_v60 = vld [vmem:[#allocation2 + $0xe0] sm:$0xff]  ;;  %v91_v61 = vld [vmem:[#allocation2 + $0xe8] sm:$0xff] }
  0x3b   :  { %1164 = vmatpush3.msra.mxu1 %v508_v19  ;;  %1085 = vmatprep.subr.mxu0 %v99_v20  ;;  %v92_v62 = vld [vmem:[#allocation2 + $0xf0] sm:$0xff]  ;;  %v93_v63 = vld [vmem:[#allocation2 + $0xf8] sm:$0xff]  ;;  %v1402_v1 = vld [vmem:[%s1447_s2] ss:$0 sm:$0xff]  ;;  %s1347_s2 = smov [#allocation9]  }
  0x3c   :  { %1165 = vmatprep.subr.mxu1 %v507_v21  ;;  %1086 = vmatpush3.msra.mxu0 %v99_v20  ;;  %s792_s9 = sshll.u32 %s1347_s2, 4  ;;  %s793_s9 = int_to_ptr.vmem [resolvable:$true] %s792_s9 }
  0x3d   :  { %1166 = vmatpush3.msra.mxu1 %v507_v21  ;;  %1087 = vmatprep.subr.mxu0 %v98_v22  ;;  %s1294_s12 = scalar_lea.vmem %s793_s9, 4096  ;;  %p1299_p2 = scmp.lt.s32.totalorder %s793_s9, %s793_s9 }
  0x3e   :  { %1167 = vmatprep.subr.mxu1 %v506_v23  ;;  %1088 = vmatpush3.msra.mxu0 %v98_v22  ;;  %p1295_p1 = scmp.ne.s32.totalorder %s793_s9, %s1294_s12  ;;  %p1300_p3 = scmp.lt.s32.totalorder %s1294_s12, %s1294_s12 }
  0x3f   :  { %1168 = vmatpush3.msra.mxu1 %v506_v23  ;;  %1089 = vmatprep.subr.mxu0 %v97_v24 }
  0x40   :  { %1169 = vmatprep.subr.mxu1 %v505_v25  ;;  %1090 = vmatpush3.msra.mxu0 %v97_v24  ;;  %p1301_p4 = por %p1300_p3, %p1299_p2 }
  0x41   :  { %1170 = vmatpush3.msra.mxu1 %v505_v25  ;;  %1091 = vmatprep.subr.mxu0 %v96_v26 }
  0x42   :  { %1171 = vmatprep.subr.mxu1 %v504_v27  ;;  %1092 = vmatpush3.msra.mxu0 %v96_v26  ;;  %p1302_p5 = pnand %p1301_p4, %p1295_p1 }
  0x43   :  { %1172 = vmatpush3.msra.mxu1 %v504_v27  ;;  %1093 = vmatprep.subr.mxu0 %v95_v28 }
  0x44   :  { %1173 = vmatprep.subr.mxu1 %v503_v29  ;;  %1094 = vmatpush3.msra.mxu0 %v95_v28 }
  0x45   :  { %1097 = vmatprep.mubr.f32.mxu0 %v62_v30  ;;  %1095 = vmatprep.subr.mxu0 %v94_v31 }
  0x46   :  { %1174 = vmatpush3.msra.mxu1 %v503_v29  ;;  %1096 = vmatpush3.msra.mxu0 %v94_v31 }
  0x47   :  { %1175 = vmatprep.subr.mxu1 %v502_v32  ;;  %1098 = vmatmul.mubr.f32.vlgmr.msra.gmra.mxu0 %v63_v33 }
  0x48   :  { %1176 = vmatpush3.msra.mxu1 %v502_v32  ;;  %1177 = vmatprep.mubr.f32.mxu1 %v62_v30 }
  0x49   :  { %1100 = vmatprep.mubr.f32.mxu0 %v64_v34  ;;  %1178 = vmatmul.mubr.f32.vlgmr.msra.gmra.mxu1 %v63_v33 }
  0x4a   :  { %1180 = vmatprep.mubr.f32.mxu1 %v64_v34 }
  0x4b   :  { %1101 = vmatmul.mubr.f32.gmra.mxu0 %v65_v35 }
  0x4c   :  { %1103 = vmatprep.mubr.f32.mxu0 %v66_v36 }
  0x4d   :  { %1181 = vmatmul.mubr.f32.gmra.mxu1 %v65_v35 }
  0x4e   :  { %1183 = vmatprep.mubr.f32.mxu1 %v66_v36 }
  0x4f   :  { %1104 = vmatmul.mubr.f32.gmra.mxu0 %v67_v37 }
  0x50   :  { %1106 = vmatprep.mubr.f32.mxu0 %v68_v38 }
  0x51   :  { %1184 = vmatmul.mubr.f32.gmra.mxu1 %v67_v37 }
  0x52   :  { %1186 = vmatprep.mubr.f32.mxu1 %v68_v38 }
  0x53   :  { %1107 = vmatmul.mubr.f32.gmra.mxu0 %v69_v39 }
  0x54   :  { %1109 = vmatprep.mubr.f32.mxu0 %v70_v40 }
  0x55   :  { %1187 = vmatmul.mubr.f32.gmra.mxu1 %v69_v39 }
  0x56   :  { %1189 = vmatprep.mubr.f32.mxu1 %v70_v40 }
  0x57   :  { %1110 = vmatmul.mubr.f32.gmra.mxu0 %v71_v41 }
  0x58   :  { %1112 = vmatprep.mubr.f32.mxu0 %v72_v42 }
  0x59   :  { %1190 = vmatmul.mubr.f32.gmra.mxu1 %v71_v41 }
  0x5a   :  { %1192 = vmatprep.mubr.f32.mxu1 %v72_v42 }
  0x5b   :  { %1113 = vmatmul.mubr.f32.gmra.mxu0 %v73_v43 }
  0x5c   :  { %1115 = vmatprep.mubr.f32.mxu0 %v74_v44 }
  0x5d   :  { %1193 = vmatmul.mubr.f32.gmra.mxu1 %v73_v43 }
  0x5e   :  { %1195 = vmatprep.mubr.f32.mxu1 %v74_v44 }
  0x5f   :  { %1116 = vmatmul.mubr.f32.gmra.mxu0 %v75_v45 }
  0x60   :  { %1118 = vmatprep.mubr.f32.mxu0 %v76_v46 }
  0x61   :  { %1196 = vmatmul.mubr.f32.gmra.mxu1 %v75_v45 }
  0x62   :  { %1198 = vmatprep.mubr.f32.mxu1 %v76_v46 }
  0x63   :  { %1119 = vmatmul.mubr.f32.gmra.mxu0 %v77_v47 }
  0x64   :  { %1121 = vmatprep.mubr.f32.mxu0 %v78_v48 }
  0x65   :  { %1199 = vmatmul.mubr.f32.gmra.mxu1 %v77_v47 }
  0x66   :  { %1201 = vmatprep.mubr.f32.mxu1 %v78_v48 }
  0x67   :  { %1122 = vmatmul.mubr.f32.gmra.mxu0 %v79_v49 }
  0x68   :  { %1124 = vmatprep.mubr.f32.mxu0 %v80_v50 }
  0x69   :  { %1202 = vmatmul.mubr.f32.gmra.mxu1 %v79_v49 }
  0x6a   :  { %1204 = vmatprep.mubr.f32.mxu1 %v80_v50 }
  0x6b   :  { %1125 = vmatmul.mubr.f32.gmra.mxu0 %v81_v51 }
  0x6c   :  { %1127 = vmatprep.mubr.f32.mxu0 %v82_v52 }
  0x6d   :  { %1205 = vmatmul.mubr.f32.gmra.mxu1 %v81_v51 }
  0x6e   :  { %1207 = vmatprep.mubr.f32.mxu1 %v82_v52 }
  0x6f   :  { %1128 = vmatmul.mubr.f32.gmra.mxu0 %v83_v53 }
  0x70   :  { %1130 = vmatprep.mubr.f32.mxu0 %v84_v54 }
  0x71   :  { %1208 = vmatmul.mubr.f32.gmra.mxu1 %v83_v53 }
  0x72   :  { %1210 = vmatprep.mubr.f32.mxu1 %v84_v54 }
  0x73   :  { %1131 = vmatmul.mubr.f32.gmra.mxu0 %v85_v55 }
  0x74   :  { %1133 = vmatprep.mubr.f32.mxu0 %v86_v56 }
  0x75   :  { %1211 = vmatmul.mubr.f32.gmra.mxu1 %v85_v55 }
  0x76   :  { %1213 = vmatprep.mubr.f32.mxu1 %v86_v56 }
  0x77   :  { %1134 = vmatmul.mubr.f32.gmra.mxu0 %v87_v57 }
  0x78   :  { %1136 = vmatprep.mubr.f32.mxu0 %v88_v58 }
  0x79   :  { %1214 = vmatmul.mubr.f32.gmra.mxu1 %v87_v57 }
  0x7a   :  { %1216 = vmatprep.mubr.f32.mxu1 %v88_v58 }
  0x7b   :  { %1137 = vmatmul.mubr.f32.gmra.mxu0 %v89_v59 }
  0x7c   :  { %1139 = vmatprep.mubr.f32.mxu0 %v90_v60 }
  0x7d   :  { %1217 = vmatmul.mubr.f32.gmra.mxu1 %v89_v59 }
  0x7e   :  { %1219 = vmatprep.mubr.f32.mxu1 %v90_v60 }
  0x7f   :  { %1140 = vmatmul.mubr.f32.gmra.mxu0 %v91_v61 }
  0x80   :  { %1142 = vmatprep.mubr.f32.mxu0 %v92_v62 }
  0x81   :  { %1220 = vmatmul.mubr.f32.gmra.mxu1 %v91_v61 }
  0x82   :  { %1222 = vmatprep.mubr.f32.mxu1 %v92_v62 }
  0x83   :  { %1143 = vmatmul.mubr.f32.gmra.mxu0 %v93_v63 }
  0x85   :  { %1223 = vmatmul.mubr.f32.gmra.mxu1 %v93_v63 }
 0x107   :  { %v1099_v0 = vpop.f32.mrf.mxu0 }
 0x108   :  { %v189_v4 = vadd.f32 %v1099_v0, %v1402_v1 }
 0x109   :  { %v183_v2 = vpop.f32.mrf.mxu0  ;;  %v1179_v3 = vpop.f32.mrf.mxu1 }
 0x10a   :  { %v184_v5 = vadd.f32 %v1402_v1, %v183_v2  ;;  %744 = vst [vmem:[#allocation9 + $0x8] sm:$0xff] %v1179_v3 }
 0x10b   :  { %v1102_v6 = vpop.f32.mrf.mxu0  ;;  %v584_v7 = vpop.f32.mrf.mxu1 }
 0x10c   :  { %v877_v8 = vpack.c.bf16 %v189_v4, %v184_v5  ;;  %743 = vst [vmem:[#allocation9] sm:$0xff] %v584_v7  ;;  %v199_v11 = vadd.f32 %v1102_v6, %v1402_v1 }
 0x10d   :  { %v193_v9 = vpop.f32.mrf.mxu0  ;;  %v1182_v10 = vpop.f32.mrf.mxu1 }
 0x10e   :  { %878 = vst [vmem:[#allocation8] sm:$0xff] %v877_v8   ;;  %v194_v12 = vadd.f32 %v1402_v1, %v193_v9  ;;  %746 = vst [vmem:[#allocation9 + $0x18] sm:$0xff] %v1182_v10 }
 0x10f   :  { %v1105_v13 = vpop.f32.mrf.mxu0  ;;  %v594_v14 = vpop.f32.mrf.mxu1 }
 0x110   :  { %v882_v15 = vpack.c.bf16 %v199_v11, %v194_v12  ;;  %745 = vst [vmem:[#allocation9 + $0x10] sm:$0xff] %v594_v14  ;;  %v209_v18 = vadd.f32 %v1105_v13, %v1402_v1 }
 0x111   :  { %v203_v16 = vpop.f32.mrf.mxu0  ;;  %v1185_v17 = vpop.f32.mrf.mxu1 }
 0x112   :  { %954 = vst [vmem:[#allocation8 + $0x8] sm:$0xff] %v882_v15   ;;  %v204_v19 = vadd.f32 %v1402_v1, %v203_v16  ;;  %748 = vst [vmem:[#allocation9 + $0x28] sm:$0xff] %v1185_v17 }
 0x113   :  { %v1108_v20 = vpop.f32.mrf.mxu0  ;;  %v604_v21 = vpop.f32.mrf.mxu1 }
 0x114   :  { %v887_v22 = vpack.c.bf16 %v209_v18, %v204_v19  ;;  %747 = vst [vmem:[#allocation9 + $0x20] sm:$0xff] %v604_v21  ;;  %v219_v25 = vadd.f32 %v1108_v20, %v1402_v1 }
 0x115   :  { %v213_v23 = vpop.f32.mrf.mxu0  ;;  %v1188_v24 = vpop.f32.mrf.mxu1 }
 0x116   :  { %955 = vst [vmem:[#allocation8 + $0x10] sm:$0xff] %v887_v22   ;;  %v214_v26 = vadd.f32 %v1402_v1, %v213_v23  ;;  %750 = vst [vmem:[#allocation9 + $0x38] sm:$0xff] %v1188_v24 }
 0x117   :  { %v1111_v27 = vpop.f32.mrf.mxu0  ;;  %v614_v28 = vpop.f32.mrf.mxu1 }
 0x118   :  { %v892_v29 = vpack.c.bf16 %v219_v25, %v214_v26  ;;  %749 = vst [vmem:[#allocation9 + $0x30] sm:$0xff] %v614_v28  ;;  %v229_v32 = vadd.f32 %v1111_v27, %v1402_v1 }
 0x119   :  { %v223_v30 = vpop.f32.mrf.mxu0  ;;  %v1191_v31 = vpop.f32.mrf.mxu1 }
 0x11a   :  { %956 = vst [vmem:[#allocation8 + $0x18] sm:$0xff] %v892_v29   ;;  %v224_v33 = vadd.f32 %v1402_v1, %v223_v30  ;;  %752 = vst [vmem:[#allocation9 + $0x48] sm:$0xff] %v1191_v31 }
 0x11b   :  { %v1114_v34 = vpop.f32.mrf.mxu0  ;;  %v624_v35 = vpop.f32.mrf.mxu1 }
 0x11c   :  { %v897_v36 = vpack.c.bf16 %v229_v32, %v224_v33  ;;  %751 = vst [vmem:[#allocation9 + $0x40] sm:$0xff] %v624_v35  ;;  %v239_v39 = vadd.f32 %v1114_v34, %v1402_v1 }
 0x11d   :  { %v233_v37 = vpop.f32.mrf.mxu0  ;;  %v1194_v38 = vpop.f32.mrf.mxu1 }
 0x11e   :  { %957 = vst [vmem:[#allocation8 + $0x20] sm:$0xff] %v897_v36   ;;  %v234_v40 = vadd.f32 %v1402_v1, %v233_v37  ;;  %754 = vst [vmem:[#allocation9 + $0x58] sm:$0xff] %v1194_v38 }
 0x11f   :  { %v1117_v41 = vpop.f32.mrf.mxu0  ;;  %v634_v42 = vpop.f32.mrf.mxu1 }
 0x120   :  { %v902_v43 = vpack.c.bf16 %v239_v39, %v234_v40  ;;  %753 = vst [vmem:[#allocation9 + $0x50] sm:$0xff] %v634_v42  ;;  %v249_v46 = vadd.f32 %v1117_v41, %v1402_v1 }
 0x121   :  { %v243_v44 = vpop.f32.mrf.mxu0  ;;  %v1197_v45 = vpop.f32.mrf.mxu1 }
 0x122   :  { %958 = vst [vmem:[#allocation8 + $0x28] sm:$0xff] %v902_v43   ;;  %v244_v47 = vadd.f32 %v1402_v1, %v243_v44  ;;  %756 = vst [vmem:[#allocation9 + $0x68] sm:$0xff] %v1197_v45 }
 0x123   :  { %v1120_v48 = vpop.f32.mrf.mxu0  ;;  %v644_v49 = vpop.f32.mrf.mxu1 }
 0x124   :  { %v907_v50 = vpack.c.bf16 %v249_v46, %v244_v47  ;;  %755 = vst [vmem:[#allocation9 + $0x60] sm:$0xff] %v644_v49  ;;  %v259_v53 = vadd.f32 %v1120_v48, %v1402_v1 }
 0x125   :  { %v253_v51 = vpop.f32.mrf.mxu0  ;;  %v1200_v52 = vpop.f32.mrf.mxu1 }
 0x126   :  { %959 = vst [vmem:[#allocation8 + $0x30] sm:$0xff] %v907_v50   ;;  %v254_v54 = vadd.f32 %v1402_v1, %v253_v51  ;;  %758 = vst [vmem:[#allocation9 + $0x78] sm:$0xff] %v1200_v52 }
 0x127   :  { %v1123_v55 = vpop.f32.mrf.mxu0  ;;  %v654_v56 = vpop.f32.mrf.mxu1 }
 0x128   :  { %v912_v57 = vpack.c.bf16 %v259_v53, %v254_v54  ;;  %757 = vst [vmem:[#allocation9 + $0x70] sm:$0xff] %v654_v56  ;;  %v269_v60 = vadd.f32 %v1123_v55, %v1402_v1 }
 0x129   :  { %v263_v58 = vpop.f32.mrf.mxu0  ;;  %v1203_v59 = vpop.f32.mrf.mxu1 }
 0x12a   :  { %960 = vst [vmem:[#allocation8 + $0x38] sm:$0xff] %v912_v57   ;;  %v264_v61 = vadd.f32 %v1402_v1, %v263_v58  ;;  %760 = vst [vmem:[#allocation9 + $0x88] sm:$0xff] %v1203_v59 }
 0x12b   :  { %v1126_v62 = vpop.f32.mrf.mxu0  ;;  %v664_v63 = vpop.f32.mrf.mxu1 }
 0x12c   :  { %v917_v0 = vpack.c.bf16 %v269_v60, %v264_v61  ;;  %759 = vst [vmem:[#allocation9 + $0x80] sm:$0xff] %v664_v63  ;;  %v279_v4 = vadd.f32 %v1126_v62, %v1402_v1 }
 0x12d   :  { %v273_v2 = vpop.f32.mrf.mxu0  ;;  %v1206_v3 = vpop.f32.mrf.mxu1 }
 0x12e   :  { %961 = vst [vmem:[#allocation8 + $0x40] sm:$0xff] %v917_v0   ;;  %v274_v5 = vadd.f32 %v1402_v1, %v273_v2  ;;  %762 = vst [vmem:[#allocation9 + $0x98] sm:$0xff] %v1206_v3 }
 0x12f   :  { %v1129_v6 = vpop.f32.mrf.mxu0  ;;  %v674_v7 = vpop.f32.mrf.mxu1 }
 0x130   :  { %v922_v8 = vpack.c.bf16 %v279_v4, %v274_v5  ;;  %761 = vst [vmem:[#allocation9 + $0x90] sm:$0xff] %v674_v7  ;;  %v289_v11 = vadd.f32 %v1129_v6, %v1402_v1 }
 0x131   :  { %v283_v9 = vpop.f32.mrf.mxu0  ;;  %v1209_v10 = vpop.f32.mrf.mxu1 }
 0x132   :  { %962 = vst [vmem:[#allocation8 + $0x48] sm:$0xff] %v922_v8   ;;  %v284_v12 = vadd.f32 %v1402_v1, %v283_v9  ;;  %764 = vst [vmem:[#allocation9 + $0xa8] sm:$0xff] %v1209_v10 }
 0x133   :  { %v1132_v13 = vpop.f32.mrf.mxu0  ;;  %v684_v14 = vpop.f32.mrf.mxu1 }
 0x134   :  { %v927_v15 = vpack.c.bf16 %v289_v11, %v284_v12  ;;  %763 = vst [vmem:[#allocation9 + $0xa0] sm:$0xff] %v684_v14  ;;  %v299_v18 = vadd.f32 %v1132_v13, %v1402_v1 }
 0x135   :  { %v293_v16 = vpop.f32.mrf.mxu0  ;;  %v1212_v17 = vpop.f32.mrf.mxu1 }
 0x136   :  { %963 = vst [vmem:[#allocation8 + $0x50] sm:$0xff] %v927_v15   ;;  %v294_v19 = vadd.f32 %v1402_v1, %v293_v16  ;;  %766 = vst [vmem:[#allocation9 + $0xb8] sm:$0xff] %v1212_v17 }
 0x137   :  { %v1135_v20 = vpop.f32.mrf.mxu0  ;;  %v694_v21 = vpop.f32.mrf.mxu1 }
 0x138   :  { %v932_v22 = vpack.c.bf16 %v299_v18, %v294_v19  ;;  %765 = vst [vmem:[#allocation9 + $0xb0] sm:$0xff] %v694_v21  ;;  %v309_v25 = vadd.f32 %v1135_v20, %v1402_v1 }
 0x139   :  { %v303_v23 = vpop.f32.mrf.mxu0  ;;  %v1215_v24 = vpop.f32.mrf.mxu1 }
 0x13a   :  { %964 = vst [vmem:[#allocation8 + $0x58] sm:$0xff] %v932_v22   ;;  %v304_v26 = vadd.f32 %v1402_v1, %v303_v23  ;;  %768 = vst [vmem:[#allocation9 + $0xc8] sm:$0xff] %v1215_v24 }
 0x13b   :  { %v1138_v27 = vpop.f32.mrf.mxu0  ;;  %v704_v28 = vpop.f32.mrf.mxu1 }
 0x13c   :  { %v937_v29 = vpack.c.bf16 %v309_v25, %v304_v26  ;;  %767 = vst [vmem:[#allocation9 + $0xc0] sm:$0xff] %v704_v28  ;;  %v319_v32 = vadd.f32 %v1138_v27, %v1402_v1 }
 0x13d   :  { %v313_v30 = vpop.f32.mrf.mxu0  ;;  %v1218_v31 = vpop.f32.mrf.mxu1 }
 0x13e   :  { %965 = vst [vmem:[#allocation8 + $0x60] sm:$0xff] %v937_v29   ;;  %v314_v33 = vadd.f32 %v1402_v1, %v313_v30  ;;  %770 = vst [vmem:[#allocation9 + $0xd8] sm:$0xff] %v1218_v31 }
 0x13f   :  { %v1141_v34 = vpop.f32.mrf.mxu0  ;;  %v714_v35 = vpop.f32.mrf.mxu1 }
 0x140   :  { %v942_v36 = vpack.c.bf16 %v319_v32, %v314_v33  ;;  %769 = vst [vmem:[#allocation9 + $0xd0] sm:$0xff] %v714_v35  ;;  %v329_v39 = vadd.f32 %v1141_v34, %v1402_v1 }
 0x141   :  { %v323_v37 = vpop.f32.mrf.mxu0  ;;  %v1221_v38 = vpop.f32.mrf.mxu1 }
 0x142   :  { %966 = vst [vmem:[#allocation8 + $0x68] sm:$0xff] %v942_v36   ;;  %v324_v40 = vadd.f32 %v1402_v1, %v323_v37  ;;  %772 = vst [vmem:[#allocation9 + $0xe8] sm:$0xff] %v1221_v38 }
 0x143   :  { %v1144_v41 = vpop.f32.mrf.mxu0  ;;  %v724_v42 = vpop.f32.mrf.mxu1 }
 0x144   :  { %v947_v43 = vpack.c.bf16 %v329_v39, %v324_v40  ;;  %771 = vst [vmem:[#allocation9 + $0xe0] sm:$0xff] %v724_v42  ;;  %v339_v46 = vadd.f32 %v1144_v41, %v1402_v1 }
 0x145   :  { %v333_v44 = vpop.f32.mrf.mxu0  ;;  %v1224_v45 = vpop.f32.mrf.mxu1 }
 0x146   :  { %967 = vst [vmem:[#allocation8 + $0x70] sm:$0xff] %v947_v43   ;;  %v334_v47 = vadd.f32 %v1402_v1, %v333_v44  ;;  %774 = vst [vmem:[#allocation9 + $0xf8] sm:$0xff] %v1224_v45 }
 0x147   :  { %v734_v48 = vpop.f32.mrf.mxu1 }
 0x148   :  { %v952_v49 = vpack.c.bf16 %v339_v46, %v334_v47  ;;  %773 = vst [vmem:[#allocation9 + $0xf0] sm:$0xff] %v734_v48 }
 0x149   :  { %1305 = shalt.err (!%p1302_p5)
}
 0x14a   :  { %798 = dma.vmem_to_hbm [thread:$0]  %s793_s9, 4096, %s1450_s5, [#allocation10], %s1344_s23, %s1344_s23, %s1345_s24   ;;  %968 = vst [vmem:[#allocation8 + $0x78] sm:$0xff] %v952_v49  }
 0x14b   :  { %s1314_s15 = scalar_lea.vmem %s781_s11, 2048  ;;  %p1319_p7 = scmp.lt.s32.totalorder %s781_s11, %s781_s11 }
 0x14c   :  { %p1315_p6 = scmp.ne.s32.totalorder %s781_s11, %s1314_s15  ;;  %p1320_p8 = scmp.lt.s32.totalorder %s1314_s15, %s1314_s15 }
 0x14e   :  { %p1321_p9 = por %p1320_p8, %p1319_p7 }
 0x150   :  { %p1322_p10 = pnand %p1321_p9, %p1315_p6 }
 0x152   :  { %1325 = shalt.err (!%p1322_p10)
}
 0x153   :  { %s1349_s16 = smov 64   ;;  %s1350_s17 = smov 4  }
 0x154   :  { %786 = dma.vmem_to_hbm [thread:$0]  %s781_s11, 2048, %s1449_s4, [#allocation4], %s1349_s16, %s1349_s16, %s1350_s17  }
 0x155   :  { %1338 = dma.done.wait [#allocation4], 2048  }
 0x156   :  { %1339 = vsyncadd [#allocation4], 4294965248 }
 0x157   :  { %1340 = dma.done.wait [#allocation10], 4096  }
 0x158   :  { %1341 = vsyncadd [#allocation10], 4294963200 }
 0x159   :  { %805 = vsyncpa [#allocation3], 1 }
 0x15a   :  { %806 = vsyncpa [#allocation6], 1 }
 0x15b   :  { %807 = vsyncpa [#allocation4], 1 }
 0x15c   :  { %808 = vsyncpa [#allocation10], 1 }

</bundles_post_ra>
